<compile_context>
chip_gen: v7x
topology: tpu7x:2x2x1
jax: 0.10.0
libtpu: 0.0.40
codegen_flags: <defaults>
</compile_context>

<pallas_src>
import functools

import jax
import jax.numpy as jnp
from jax.experimental import pallas as pl
from jax.experimental.pallas import tpu as pltpu


def _stereo_bn_kernel(x_ref, g_ref, b_ref, o_ref, *, eps, inv_n):
    """One channel tile of one (or both) views.

    x_ref : (B, Ct, HW)   input block (native dtype)
    g_ref : (Ct, 1)       gamma for these merged channels
    b_ref : (Ct, 1)       beta  for these merged channels
    o_ref : (B, Ct, HW)   output block
    """
    xf = x_ref[...].astype(jnp.float32)                      # (B, Ct, HW)

    # Per-channel mean over (B, HW): reduce leading axis, then lane axis.
    s = jnp.sum(xf, axis=0)                                  # (Ct, HW)
    mean = jnp.sum(s, axis=1, keepdims=True) * inv_n         # (Ct, 1)

    centered = xf - mean[None]                               # (B, Ct, HW)
    sq = centered * centered
    var = jnp.sum(jnp.sum(sq, axis=0), axis=1, keepdims=True) * inv_n  # (Ct, 1)

    inv_std = jax.lax.rsqrt(var + eps)                       # EUP
    scale = g_ref[...].astype(jnp.float32) * inv_std         # (Ct, 1)
    shift = b_ref[...].astype(jnp.float32)                   # (Ct, 1)

    o_ref[...] = (centered * scale[None] + shift[None]).astype(o_ref.dtype)


def _pick_channel_tile(c2, per_channel_f32_bytes, budget=4 * 1024 * 1024):
    """Largest sublane-aligned (multiple of 8, or full) channel tile whose f32
    working block fits the VMEM budget."""
    cands = sorted({c2} | {d for d in range(8, c2, 8) if c2 % d == 0},
                   reverse=True)
    for ct in cands:
        if ct * per_channel_f32_bytes <= budget:
            return ct
    return cands[-1]


def stereo_batchnorm2d(x, gamma=None, beta=None, *, eps=1e-5):
    """x: (B, C, 2, H, W); gamma/beta: (2, C) = (left-params, right-params) or None.
    Returns (B, C, 2, H, W) — matches StereoBatchNorm2d.forward (training mode)."""
    B, C, two, H, W = x.shape
    assert two == 2
    C2 = 2 * C
    HW = H * W

    # Free reshapes only (adjacent-dim collapses in row-major layout).
    xr = x.reshape(B, C2, HW)

    if gamma is None:
        gamma = jnp.ones((2, C), x.dtype)
    if beta is None:
        beta = jnp.zeros((2, C), x.dtype)
    # (view, channel) -> merged channel order c*2 + v, as 2-D (C2, 1) VMEM operands.
    g2 = jnp.transpose(gamma, (1, 0)).reshape(C2, 1)
    b2 = jnp.transpose(beta, (1, 0)).reshape(C2, 1)

    ct = _pick_channel_tile(C2, B * HW * 4)
    grid = (C2 // ct,)

    kernel = functools.partial(_stereo_bn_kernel, eps=eps, inv_n=1.0 / (B * HW))

    out = pl.pallas_call(
        kernel,
        out_shape=jax.ShapeDtypeStruct((B, C2, HW), x.dtype),
        grid_spec=pltpu.PrefetchScalarGridSpec(
            num_scalar_prefetch=0,
            grid=grid,
            in_specs=[
                pl.BlockSpec((B, ct, HW), lambda j: (0, j, 0)),
                pl.BlockSpec((ct, 1), lambda j: (j, 0)),
                pl.BlockSpec((ct, 1), lambda j: (j, 0)),
            ],
            out_specs=pl.BlockSpec((B, ct, HW), lambda j: (0, j, 0)),
        ),
        compiler_params=pltpu.CompilerParams(
            dimension_semantics=("parallel",),
            vmem_limit_bytes=32 * 1024 * 1024,
        ),
    )(xr, g2, b2)

    return out.reshape(B, C, 2, H, W)


def stereo_batchnorm2d_ref(x, gamma=None, beta=None, *, eps=1e-5):
    """Pure-JAX reference (training-mode BatchNorm2d per view)."""
    outs = []
    for v in range(2):
        xv = x[:, :, v].astype(jnp.float32)                  # (B, C, H, W)
        mean = jnp.mean(xv, axis=(0, 2, 3), keepdims=True)
        var = jnp.mean((xv - mean) ** 2, axis=(0, 2, 3), keepdims=True)
        y = (xv - mean) * jax.lax.rsqrt(var + eps)
        if gamma is not None:
            y = y * gamma[v][None, :, None, None] + beta[v][None, :, None, None]
        outs.append(y.astype(x.dtype))
    return jnp.stack(outs, axis=2)


if __name__ == "__main__":
    B, C, H, W = 2, 4, 16, 16

    key = jax.random.PRNGKey(0)
    kx, kg, kb = jax.random.split(key, 3)

    # Non-trivial mean/std so the normalization path is actually exercised.
    x = 2.0 * jax.random.normal(kx, (B, C, 2, H, W), jnp.float32) + 0.5
    # affine=True params (module default init is gamma=1, beta=0; perturb them here).
    gamma = 1.0 + 0.1 * jax.random.normal(kg, (2, C), jnp.float32)
    beta = 0.1 * jax.random.normal(kb, (2, C), jnp.float32)

    out = stereo_batchnorm2d(x, gamma, beta, eps=1e-5)
    out = jax.block_until_ready(out)

    ref = stereo_batchnorm2d_ref(x, gamma, beta, eps=1e-5)
    assert out.shape == (B, C, 2, H, W), out.shape
    assert jnp.allclose(out, ref, atol=1e-4, rtol=1e-4), \
        f"max err {jnp.max(jnp.abs(out - ref))}"

    print("KERNEL_OK")
</pallas_src>

<mosaic_0001>
module attributes {stable_mosaic.version = 11 : i64} {
  func.func @_stereo_bn_kernel(%arg0: i32, %arg1: memref<2x8x256xf32, #tpu.memory_space<vmem>>, %arg2: memref<8x1xf32, #tpu.memory_space<vmem>>, %arg3: memref<8x1xf32, #tpu.memory_space<vmem>>, %arg4: memref<2x8x256xf32, #tpu.memory_space<vmem>>) attributes {dimension_semantics = [#tpu.dimension_semantics<parallel>], iteration_bounds = array<i64: 1>, scalar_prefetch = 0 : i64, scratch_operands = 0 : i64, tpu.core_type = #tpu.core_type<tc>, window_params = [{transform_indices = @transform_0, window_bounds = array<i64: 2, 8, 256>}, {transform_indices = @transform_1, window_bounds = array<i64: 8, 1>}, {transform_indices = @transform_2, window_bounds = array<i64: 8, 1>}, {transform_indices = @transform_3, window_bounds = array<i64: 2, 8, 256>}]} {
    %c0 = arith.constant 0 : index
    %c0_0 = arith.constant 0 : index
    %c0_1 = arith.constant 0 : index
    %0 = vector.load %arg1[%c0, %c0_0, %c0_1] : memref<2x8x256xf32, #tpu.memory_space<vmem>>, vector<2x8x256xf32>
    %cst = arith.constant dense<0.000000e+00> : vector<8x256xf32>
    %1 = vector.multi_reduction <add>, %0, %cst [0] : vector<2x8x256xf32> to vector<8x256xf32>
    %cst_2 = arith.constant dense<0.000000e+00> : vector<8xf32>
    %2 = vector.multi_reduction <add>, %1, %cst_2 [1] : vector<8x256xf32> to vector<8xf32>
    %3 = vector.shape_cast %2 : vector<8xf32> to vector<8x1xf32>
    %cst_3 = arith.constant 0.001953125 : f32
    %4 = vector.broadcast %cst_3 : f32 to vector<8x1xf32>
    %5 = arith.mulf %3, %4 : vector<8x1xf32>
    %6 = vector.shape_cast %5 : vector<8x1xf32> to vector<1x8x1xf32>
    %7 = vector.broadcast %6 : vector<1x8x1xf32> to vector<2x8x256xf32>
    %8 = arith.subf %0, %7 : vector<2x8x256xf32>
    %9 = arith.mulf %8, %8 : vector<2x8x256xf32>
    %cst_4 = arith.constant dense<0.000000e+00> : vector<8x256xf32>
    %10 = vector.multi_reduction <add>, %9, %cst_4 [0] : vector<2x8x256xf32> to vector<8x256xf32>
    %cst_5 = arith.constant dense<0.000000e+00> : vector<8xf32>
    %11 = vector.multi_reduction <add>, %10, %cst_5 [1] : vector<8x256xf32> to vector<8xf32>
    %12 = vector.shape_cast %11 : vector<8xf32> to vector<8x1xf32>
    %cst_6 = arith.constant 0.001953125 : f32
    %13 = vector.broadcast %cst_6 : f32 to vector<8x1xf32>
    %14 = arith.mulf %12, %13 : vector<8x1xf32>
    %cst_7 = arith.constant 9.99999974E-6 : f32
    %15 = vector.broadcast %cst_7 : f32 to vector<8x1xf32>
    %16 = arith.addf %14, %15 : vector<8x1xf32>
    %17 = math.rsqrt %16 : vector<8x1xf32>
    %c0_8 = arith.constant 0 : index
    %c0_9 = arith.constant 0 : index
    %18 = vector.load %arg2[%c0_8, %c0_9] : memref<8x1xf32, #tpu.memory_space<vmem>>, vector<8x1xf32>
    %19 = arith.mulf %18, %17 : vector<8x1xf32>
    %c0_10 = arith.constant 0 : index
    %c0_11 = arith.constant 0 : index
    %20 = vector.load %arg3[%c0_10, %c0_11] : memref<8x1xf32, #tpu.memory_space<vmem>>, vector<8x1xf32>
    %21 = vector.shape_cast %19 : vector<8x1xf32> to vector<1x8x1xf32>
    %22 = vector.broadcast %21 : vector<1x8x1xf32> to vector<2x8x256xf32>
    %23 = arith.mulf %8, %22 : vector<2x8x256xf32>
    %24 = vector.shape_cast %20 : vector<8x1xf32> to vector<1x8x1xf32>
    %25 = vector.broadcast %24 : vector<1x8x1xf32> to vector<2x8x256xf32>
    %26 = arith.addf %23, %25 : vector<2x8x256xf32>
    %c0_12 = arith.constant 0 : index
    %c0_13 = arith.constant 0 : index
    %c0_14 = arith.constant 0 : index
    %27 = vector.load %arg4[%c0_12, %c0_13, %c0_14] : memref<2x8x256xf32, #tpu.memory_space<vmem>>, vector<2x8x256xf32>
    tpu.vector_store %arg4[%c0_12, %c0_13, %c0_14], %26 {strides = array<i32>} : memref<2x8x256xf32, #tpu.memory_space<vmem>>, vector<2x8x256xf32>,
    return
  }
  func.func @transform_0(%arg0: i32) -> (i32, i32, i32) {
    %c0_i32 = arith.constant 0 : i32
    %c0_i32_0 = arith.constant 0 : i32
    %c0_i32_1 = arith.constant 0 : i32
    return %c0_i32, %arg0, %c0_i32_0 : i32, i32, i32
  }
  func.func @transform_1(%arg0: i32) -> (i32, i32) {
    %c0_i32 = arith.constant 0 : i32
    %c0_i32_0 = arith.constant 0 : i32
    return %arg0, %c0_i32 : i32, i32
  }
  func.func @transform_2(%arg0: i32) -> (i32, i32) {
    %c0_i32 = arith.constant 0 : i32
    %c0_i32_0 = arith.constant 0 : i32
    return %arg0, %c0_i32 : i32, i32
  }
  func.func @transform_3(%arg0: i32) -> (i32, i32, i32) {
    %c0_i32 = arith.constant 0 : i32
    %c0_i32_0 = arith.constant 0 : i32
    %c0_i32_1 = arith.constant 0 : i32
    return %c0_i32, %arg0, %c0_i32_0 : i32, i32, i32
  }
}

</mosaic_0001>

<bundles_post_ra>
// kernel: tpu_custom_call.1
= control target key start
LH: loop header
LB: loop body
LE: loop exit
PB: predicated region body
PF: predicated region fallthrough
CT: control target
= control target key end

     0   :  { %8 = vsyncpa [#allocation3], 0  ;;  %s215_s0 = inlined_call_operand.hbm [shape: f32[2,8,256], index: 0, kind: input, shape index: {}]   ;;  %s216_s1 = inlined_call_operand.vmem [shape: f32[8,1], index: 1, kind: input, shape index: {}]   ;;  %s217_s2 = inlined_call_operand.vmem [shape: f32[8,1], index: 2, kind: input, shape index: {}]   ;;  %s218_s3 = inlined_call_operand.hbm [shape: f32[2,8,256], index: 3, kind: output, shape index: {}]  }
   0x1   :  { %9 = vsyncpa [#allocation4], 0  ;;  %s154_s12 = smov [#allocation2]   ;;  %s106_s16 = scalar_lea.hbm %s215_s0, 512 }
   0x2   :  { %s15_s13 = sshll.u32 %s154_s12, 4  ;;  %p107_p0 = scmp.ne.s32.totalorder %s215_s0, %s106_s16  ;;  %s16_s13 = int_to_ptr.vmem [resolvable:$true] %s15_s13 }
   0x3   :  { %p110_p1 = scmp.lt.u32.totalorder %s106_s16, %s215_s0 }
   0x5   :  { %p112_p2 = pnand %p110_p1, %p107_p0 }
   0x7   :  { %115 = shalt.err (!%p112_p2)
}
   0x8   :  { %s116_s21 = scalar_lea.vmem %s16_s13, 512  ;;  %p121_p4 = scmp.lt.s32.totalorder %s16_s13, %s16_s13 }
   0x9   :  { %p117_p3 = scmp.ne.s32.totalorder %s16_s13, %s116_s21  ;;  %p122_p5 = scmp.lt.s32.totalorder %s116_s21, %s116_s21 }
   0xb   :  { %p123_p6 = por %p122_p5, %p121_p4 }
   0xd   :  { %p124_p7 = pnand %p123_p6, %p117_p3 }
   0xf   :  { %127 = shalt.err (!%p124_p7)
}
  0x10   :  { %s155_s22 = smov 256   ;;  %s156_s23 = smov 16  }
  0x11   :  { %21 = dma.hbm_to_vmem [thread:$0]  %s215_s0, 512, %s16_s13, [#allocation3], %s155_s22, %s155_s22, %s156_s23  }
  0x12   :  { %150 = dma.done.wait [#allocation3], 512  }
  0x13   :  { %151 = vsyncadd [#allocation3], 4294966784  ;;  %v29_v0 = vld [vmem:[#allocation2] sm:$0xff]  ;;  %v30_v1 = vld [vmem:[#allocation2 + $0x8] sm:$0xff]  ;;  %v157_v20 = vmov 0   ;;  %s158_s29 = smov [#allocation5]  }
  0x14   :  { %v31_v2 = vld [vmem:[#allocation2 + $0x10] sm:$0xff]  ;;  %v32_v3 = vld [vmem:[#allocation2 + $0x18] sm:$0xff]  ;;  %102 = vset.pattern.permute.xlu1 %v157_v20  ;;  %103 = vset.pattern.permute.xlu0 %v157_v20  ;;  %v55_v24 = vld [vmem:[%s216_s1] sm:$0xff]  ;;  %s85_s30 = sshll.u32 %s158_s29, 4  ;;  %s86_s30 = int_to_ptr.vmem [resolvable:$true] %s85_s30 }
  0x15   :  { %v33_v4 = vadd.f32 %v31_v2, %v29_v0  ;;  %v34_v5 = vadd.f32 %v32_v3, %v30_v1  ;;  %v57_v27 = vld [vmem:[%s217_s2] sm:$0xff]  ;;  %s128_s1 = scalar_lea.vmem %s86_s30, 512  ;;  %p133_p9 = scmp.lt.s32.totalorder %s86_s30, %s86_s30 }
  0x16   :  { %p129_p8 = scmp.ne.s32.totalorder %s86_s30, %s128_s1  ;;  %p134_p10 = scmp.lt.s32.totalorder %s128_s1, %s128_s1 }
  0x17   :  { %v35_v6 = vadd.f32 %v34_v5, %v33_v4 }
  0x18   :  { %p135_p11 = por %p134_p10, %p133_p9 }
  0x19   :  { %36 = vadd.xlane.f32.xlu0 %v35_v6 }
  0x1a   :  { %p136_p12 = pnand %p135_p11, %p129_p8 }
  0xa6   :  { %v37_v7 = vpop.xlane.xlu0 %36 }
  0xa7   :  { %v38_v8 = vmul.f32 0.001953125, %v37_v7 }
  0xa9   :  { %v39_v9 = vsub.f32 %v29_v0, %v38_v8  ;;  %v40_v10 = vsub.f32 %v30_v1, %v38_v8  ;;  %v41_v11 = vsub.f32 %v31_v2, %v38_v8  ;;  %v42_v12 = vsub.f32 %v32_v3, %v38_v8 }
  0xab   :  { %v43_v13 = vmul.f32 %v39_v9, %v39_v9  ;;  %v44_v14 = vmul.f32 %v40_v10, %v40_v10  ;;  %v45_v15 = vmul.f32 %v41_v11, %v41_v11  ;;  %v46_v16 = vmul.f32 %v42_v12, %v42_v12 }
  0xad   :  { %v47_v17 = vadd.f32 %v45_v15, %v43_v13  ;;  %v48_v18 = vadd.f32 %v46_v16, %v44_v14 }
  0xaf   :  { %v49_v19 = vadd.f32 %v48_v18, %v47_v17 }
  0xb1   :  { %50 = vadd.xlane.f32.xlu0 %v49_v19 }
 0x13e   :  { %v51_v21 = vpop.xlane.xlu0 %50 }
 0x13f   :  { %v52_v22 = vmul.f32 0.001953125, %v51_v21 }
 0x141   :  { %v53_v23 = vadd.f32 1e-05, %v52_v22 }
 0x143   :  { %104 = vrsqrt.f32 %v53_v23 }
 0x14d   :  { %v105_v25 = vpop.eup %104 }
 0x14e   :  { %v56_v26 = vmul.f32 %v105_v25, %v55_v24 }
 0x150   :  { %60 = vperm.xlu1 %102, %v56_v26  }
 0x154   :  { %69 = vperm.xlu1 %102, %v57_v27  }
 0x1cf   :  { %v61_v28 = vpop.permute.xlu1 %60 }
 0x1d0   :  { %v63_v29 = vmul.f32 %v61_v28, %v39_v9  ;;  %v64_v30 = vmul.f32 %v61_v28, %v40_v10  ;;  %v65_v31 = vmul.f32 %v61_v28, %v41_v11  ;;  %v66_v32 = vmul.f32 %v61_v28, %v42_v12 }
 0x1d3   :  { %v70_v33 = vpop.permute.xlu1 %69 }
 0x1d4   :  { %v72_v34 = vadd.f32 %v70_v33, %v63_v29  ;;  %v73_v35 = vadd.f32 %v70_v33, %v64_v30  ;;  %v74_v36 = vadd.f32 %v70_v33, %v65_v31  ;;  %v75_v37 = vadd.f32 %v70_v33, %v66_v32 }
 0x1d6   :  { %76 = vst [vmem:[#allocation5] sm:$0xff] %v72_v34  ;;  %77 = vst [vmem:[#allocation5 + $0x8] sm:$0xff] %v73_v35 }
 0x1d7   :  { %78 = vst [vmem:[#allocation5 + $0x10] sm:$0xff] %v74_v36  ;;  %79 = vst [vmem:[#allocation5 + $0x18] sm:$0xff] %v75_v37 }
 0x1d8   :  { %139 = shalt.err (!%p136_p12)
}
 0x1d9   :  { %s140_s5 = scalar_lea.hbm %s218_s3, 512 }
 0x1da   :  { %p141_p13 = scmp.ne.s32.totalorder %s218_s3, %s140_s5  ;;  %p144_p0 = scmp.lt.u32.totalorder %s140_s5, %s218_s3 }
 0x1dc   :  { %p146_p1 = pnand %p144_p0, %p141_p13 }
 0x1de   :  { %149 = shalt.err (!%p146_p1)
}
 0x1df   :  { %91 = dma.vmem_to_hbm [thread:$0]  %s86_s30, 512, %s218_s3, [#allocation4], %s155_s22, %s155_s22, %s156_s23  }
 0x1e0   :  { %152 = dma.done.wait [#allocation4], 512  }
 0x1e1   :  { %153 = vsyncadd [#allocation4], 4294966784 }
 0x1e2   :  { %95 = vsyncpa [#allocation3], 1 }
 0x1e3   :  { %96 = vsyncpa [#allocation4], 1 }

</bundles_post_ra>
